<compile_context>
chip_gen: v7x
topology: tpu7x:2x2x1
jax: 0.10.0
libtpu: 0.0.40
codegen_flags: <defaults>
</compile_context>

<pallas_src>
import numpy as np
import jax
import jax.numpy as jnp
from jax.experimental import pallas as pl
from jax.experimental.pallas import tpu as pltpu


def _round_up(a, b):
    return -(-a // b) * b


# ----------------------------------------------------------------------------
# Constant-grid construction (verbatim port of the PyTorch module's __init__).
# ----------------------------------------------------------------------------
def _equirect_facetype(equ_h, equ_w):
    tp = np.roll(
        np.arange(4).repeat(equ_w // 4)[None, :].repeat(equ_h, 0),
        3 * equ_w // 8, 1)
    mask = np.zeros((equ_h, equ_w // 4), bool)
    idx = np.linspace(-np.pi, np.pi, equ_w // 4) / 4
    idx = equ_h // 2 - np.round(np.arctan(np.cos(idx)) * equ_h / np.pi).astype(int)
    for i, j in enumerate(idx):
        mask[:j, i] = 1
    mask = np.roll(np.concatenate([mask] * 4, 1), 3 * equ_w // 8, 1)
    tp[mask] = 4
    tp[np.flip(mask, 0)] = 5
    return tp


def _equirect_faceuv(tp, equ_h, equ_w):
    lon = ((np.linspace(0, equ_w - 1, num=equ_w, dtype=np.float32) + 0.5)
           / equ_w - 0.5) * 2 * np.pi
    lat = -((np.linspace(0, equ_h - 1, num=equ_h, dtype=np.float32) + 0.5)
            / equ_h - 0.5) * np.pi
    lon, lat = np.meshgrid(lon, lat)
    coor_u = np.zeros((equ_h, equ_w), dtype=np.float32)
    coor_v = np.zeros((equ_h, equ_w), dtype=np.float32)
    for i in range(4):
        m = tp == i
        coor_u[m] = 0.5 * np.tan(lon[m] - np.pi * i / 2)
        coor_v[m] = -0.5 * np.tan(lat[m]) / np.cos(lon[m] - np.pi * i / 2)
    m = tp == 4
    c = 0.5 * np.tan(np.pi / 2 - lat[m])
    coor_u[m] = c * np.sin(lon[m])
    coor_v[m] = c * np.cos(lon[m])
    m = tp == 5
    c = 0.5 * np.tan(np.pi / 2 - np.abs(lat[m]))
    coor_u[m] = c * np.sin(lon[m])
    coor_v[m] = -c * np.cos(lon[m])
    coor_u = (np.clip(coor_u, -0.5, 0.5) * 2).astype(np.float32)
    coor_v = (np.clip(coor_v, -0.5, 0.5) * 2).astype(np.float32)
    tp_norm = (tp.astype(np.float32) / np.float32(2.5) - np.float32(1.0))
    return coor_u, coor_v, tp_norm


def _trilinear_corners(face_w, equ_h, equ_w):
    """Corner indices + weights of grid_sample(trilinear, border, align_corners=True)."""
    tp = _equirect_facetype(equ_h, equ_w)
    coor_u, coor_v, tp_norm = _equirect_faceuv(tp, equ_h, equ_w)
    D, H, Wi = 6, face_w, face_w
    x = coor_u.reshape(-1)
    y = coor_v.reshape(-1)
    z = tp_norm.reshape(-1)
    half = np.float32(0.5)
    one = np.float32(1.0)
    ix = np.clip((x + one) * half * np.float32(Wi - 1), 0, Wi - 1).astype(np.float32)
    iy = np.clip((y + one) * half * np.float32(H - 1), 0, H - 1).astype(np.float32)
    iz = np.clip((z + one) * half * np.float32(D - 1), 0, D - 1).astype(np.float32)
    ix0 = np.floor(ix).astype(np.int64); fx = (ix - ix0).astype(np.float32)
    iy0 = np.floor(iy).astype(np.int64); fy = (iy - iy0).astype(np.float32)
    iz0 = np.floor(iz).astype(np.int64); fz = (iz - iz0).astype(np.float32)
    ix1 = np.minimum(ix0 + 1, Wi - 1)
    iy1 = np.minimum(iy0 + 1, H - 1)
    iz1 = np.minimum(iz0 + 1, D - 1)
    corners = []
    for zc, wz in ((iz0, one - fz), (iz1, fz)):
        for yc, wy in ((iy0, one - fy), (iy1, fy)):
            for xc, wx in ((ix0, one - fx), (ix1, fx)):
                corners.append((zc, yc, xc, (wz * wy * wx).astype(np.float32)))
    return corners


# ----------------------------------------------------------------------------
# CSR-style block-sparse packing of the constant sampling map: only the weight
# blocks that carry a nonzero weight are stored (no per-tile max padding).
# ----------------------------------------------------------------------------
def _build_csr_blocks(face_w, equ_h, equ_w, tk, tn):
    fw = face_w
    P = equ_h * equ_w
    K = fw * 6 * fw
    Kp = _round_up(K, tk)
    Pp = _round_up(P, tn)
    nP = Pp // tn

    rows_l, cols_l, w_l = [], [], []
    base_rows = np.arange(P, dtype=np.int64)
    for zc, yc, xc, w in _trilinear_corners(face_w, equ_h, equ_w):
        # Native NCHW flat layout of the (fw, 6*fw) input: col = y*6*fw + face*fw + x
        cols_l.append(yc * (6 * fw) + zc * fw + xc)
        rows_l.append(base_rows)
        w_l.append(w)
    rows = np.concatenate(rows_l)
    cols = np.concatenate(cols_l)
    wts = np.concatenate(w_l).astype(np.float32)
    nz = wts != 0.0                      # drop exactly-zero corner weights (exact)
    rows, cols, wts = rows[nz], cols[nz], wts[nz]

    tile_of = rows // tn
    kblk_of = cols // tk

    blk_tile, blk_kidx, blk_first, blocks = [], [], [], []
    for j in range(nP):
        sel_tile = tile_of == j
        kbs = np.unique(kblk_of[sel_tile])
        if kbs.size == 0:
            # fully-padded output tile: still emit one all-zero block so the
            # output tile gets zeroed and written (cannot happen when P > 0,
            # but kept for safety).
            kbs = np.zeros((1,), dtype=np.int64)
        for s, b in enumerate(kbs):
            blk_tile.append(j)
            blk_kidx.append(int(b))
            blk_first.append(1 if s == 0 else 0)
            blkw = np.zeros((tk, tn), dtype=np.float32)
            sel = sel_tile & (kblk_of == b)
            # handles duplicated border-clamped corners via np.add.at
            np.add.at(blkw, (cols[sel] - b * tk, rows[sel] - j * tn), wts[sel])
            blocks.append(blkw)

    num_blocks = len(blocks)
    packed = np.stack(blocks, 0).reshape(num_blocks * tk, tn)
    meta = dict(
        blk_tile=np.asarray(blk_tile, dtype=np.int32),
        blk_kidx=np.asarray(blk_kidx, dtype=np.int32),
        blk_first=np.asarray(blk_first, dtype=np.int32),
    )
    return meta, packed, P, K, Pp, Kp, nP, num_blocks


# ----------------------------------------------------------------------------
# Pallas kernels: block-sparse MXU matmul with an f32 VMEM accumulator that is
# zeroed on the first block of each output tile.
# ----------------------------------------------------------------------------
def _make_resident_kernel(tk):
    # Activation (Mp, Kp) fully resident in VMEM (DMA'd once); the tk window is
    # selected in-kernel with a lane-aligned dynamic slice.
    def kernel(tile_ref, kidx_ref, first_ref, x_ref, w_ref, o_ref, acc_ref):
        del tile_ref  # consumed only by the output index_map
        i = pl.program_id(0)

        @pl.when(first_ref[i] == 1)
        def _():
            acc_ref[...] = jnp.zeros_like(acc_ref)

        k0 = pl.multiple_of(kidx_ref[i] * tk, tk)
        acc_ref[...] += jnp.dot(x_ref[:, pl.ds(k0, tk)], w_ref[...],
                                preferred_element_type=jnp.float32)
        # HBM writeback only happens when the output block index changes
        # (i.e. once per output tile), so storing every step is cheap.
        o_ref[...] = acc_ref[...].astype(o_ref.dtype)

    return kernel


def _streamed_kernel(tile_ref, kidx_ref, first_ref, x_ref, w_ref, o_ref, acc_ref):
    # Activation streamed block-by-block via a data-dependent index_map.
    del tile_ref, kidx_ref  # consumed only by the index_maps
    i = pl.program_id(0)

    @pl.when(first_ref[i] == 1)
    def _():
        acc_ref[...] = jnp.zeros_like(acc_ref)

    acc_ref[...] += jnp.dot(x_ref[...], w_ref[...],
                            preferred_element_type=jnp.float32)
    o_ref[...] = acc_ref[...].astype(o_ref.dtype)


class Cube2EquirecPallas:
    def __init__(self, face_w, equ_h, equ_w, *, tk=128, tn=256,
                 weight_dtype=jnp.bfloat16, compute_dtype=jnp.bfloat16,
                 force_streamed=False):
        assert tk % 128 == 0 and tn % 128 == 0
        self.face_w, self.equ_h, self.equ_w = face_w, equ_h, equ_w
        P = equ_h * equ_w
        tn = min(tn, _round_up(P, 128))      # don't over-pad tiny outputs
        self.tk, self.tn = tk, tn
        self.weight_dtype = weight_dtype
        self.compute_dtype = compute_dtype
        self.force_streamed = force_streamed

        meta, packed, self.P, self.K, self.Pp, self.Kp, self.nP, self.num_blocks = \
            _build_csr_blocks(face_w, equ_h, equ_w, tk, tn)

        # 1D int32 scalar-prefetch tables (1D SMEM -> no 128-wide minor padding).
        self.blk_tile = jnp.asarray(meta["blk_tile"])    # (num_blocks,)
        self.blk_kidx = jnp.asarray(meta["blk_kidx"])    # (num_blocks,)
        self.blk_first = jnp.asarray(meta["blk_first"])  # (num_blocks,)
        # Real (non-zero) weight blocks only, packed 2D for plain contiguous DMA.
        self.w_packed = jnp.asarray(packed, dtype=weight_dtype)  # (num_blocks*tk, tn)

    def __call__(self, cube_feat):
        bs, ch, h, w = cube_feat.shape
        assert h == self.face_w and w == 6 * self.face_w
        out_dtype = cube_feat.dtype
        M = bs * ch
        Mp = _round_up(max(M, 1), 8)

        # Pure reshape (packed weights were built for the native NCHW flat
        # layout), plus a ONE-TIME cast to the compute dtype so the activation
        # stream is bf16, not f32.
        x = cube_feat.reshape(M, h * w).astype(self.compute_dtype)
        if self.Kp != h * w or Mp != M:
            x = jnp.pad(x, ((0, Mp - M), (0, self.Kp - h * w)))

        tk, tn, nb = self.tk, self.tn, self.num_blocks
        w_isz = jnp.dtype(self.weight_dtype).itemsize
        a_isz = jnp.dtype(self.compute_dtype).itemsize
        o_isz = jnp.dtype(out_dtype).itemsize

        resident_bytes = (Mp * self.Kp * a_isz        # resident activation
                          + 3 * tk * tn * w_isz       # weight multi-buffering
                          + Mp * tn * 4               # f32 accumulator
                          + 2 * Mp * tn * o_isz)      # output double buffer
        use_resident = (not self.force_streamed) and resident_bytes <= 40 * 1024 * 1024

        if use_resident:
            kernel = _make_resident_kernel(tk)
            x_spec = pl.BlockSpec((Mp, self.Kp), lambda i, t, k, f: (0, 0))
            act_bytes = Mp * self.Kp * a_isz
        else:
            kernel = _streamed_kernel
            x_spec = pl.BlockSpec((Mp, tk), lambda i, t, k, f: (0, k[i]))
            act_bytes = nb * Mp * tk * a_isz

        cost = pl.CostEstimate(
            flops=int(2 * Mp * tn * nb * tk),
            transcendentals=0,
            bytes_accessed=int(nb * tk * tn * w_isz + act_bytes + Mp * self.Pp * o_isz),
        )

        cparams = dict(dimension_semantics=("arbitrary",))
        if use_resident and resident_bytes > 24 * 1024 * 1024:
            cparams["vmem_limit_bytes"] = int(min(resident_bytes + (8 << 20), 60 << 20))

        out = pl.pallas_call(
            kernel,
            out_shape=jax.ShapeDtypeStruct((Mp, self.Pp), out_dtype),
            grid_spec=pltpu.PrefetchScalarGridSpec(
                num_scalar_prefetch=3,
                grid=(nb,),
                in_specs=[
                    x_spec,
                    # packed real weight blocks, streamed densely (2D, no
                    # singleton leading dim)
                    pl.BlockSpec((tk, tn), lambda i, t, k, f: (i, 0)),
                ],
                # data-dependent output tile; consecutive blocks of a tile keep
                # the same index so HBM writeback happens once per tile
                out_specs=pl.BlockSpec((Mp, tn), lambda i, t, k, f: (0, t[i])),
                scratch_shapes=[pltpu.VMEM((Mp, tn), jnp.float32)],
            ),
            compiler_params=pltpu.CompilerParams(**cparams),
            cost_estimate=cost,
        )(self.blk_tile, self.blk_kidx, self.blk_first, x, self.w_packed)

        # Output is already in the model dtype; just crop & reshape.
        return out[:M, :self.P].reshape(bs, ch, self.equ_h, self.equ_w)


# ----------------------------------------------------------------------------
# Pure-numpy reference (direct 8-corner gather) for correctness checking.
# ----------------------------------------------------------------------------
def _reference_forward(cube_feat_np, face_w, equ_h, equ_w):
    bs, ch, h, w = cube_feat_np.shape
    fw = face_w
    cube = cube_feat_np.reshape(bs, ch, fw, 6, fw).transpose(0, 1, 3, 2, 4)  # (bs,ch,6,fw,fw)
    out = np.zeros((bs, ch, equ_h * equ_w), dtype=np.float32)
    for zc, yc, xc, wgt in _trilinear_corners(face_w, equ_h, equ_w):
        out += cube[:, :, zc, yc, xc] * wgt[None, None, :]
    return out.reshape(bs, ch, equ_h, equ_w)


if __name__ == "__main__":
    face_w, equ_h, equ_w = 8, 16, 32
    bs, ch = 2, 4
    key = jax.random.PRNGKey(0)
    cube_feat = jax.random.normal(key, (bs, ch, face_w, 6 * face_w), dtype=jnp.float32)

    ref = _reference_forward(np.asarray(cube_feat), face_w, equ_h, equ_w)

    # Path 1: VMEM-resident activation (default at this size).
    mod = Cube2EquirecPallas(face_w, equ_h, equ_w)
    out = jax.block_until_ready(mod(cube_feat))
    assert out.shape == (bs, ch, equ_h, equ_w), out.shape
    # bf16 packed weights + bf16 activations -> loosened tolerance vs f32 ref.
    np.testing.assert_allclose(np.asarray(out, dtype=np.float32), ref,
                               rtol=2e-2, atol=5e-2)

    # Path 2: streamed activation blocks (exercised for coverage of the
    # large-feature-map fallback).
    mod_s = Cube2EquirecPallas(face_w, equ_h, equ_w, force_streamed=True)
    out_s = jax.block_until_ready(mod_s(cube_feat))
    np.testing.assert_allclose(np.asarray(out_s, dtype=np.float32), ref,
                               rtol=2e-2, atol=5e-2)

    print("KERNEL_OK")
</pallas_src>

<mosaic_0001>
module attributes {stable_mosaic.version = 11 : i64} {
  func.func @kernel(%arg0: i32, %arg1: memref<6xi32, #tpu.memory_space<smem>>, %arg2: memref<6xi32, #tpu.memory_space<smem>>, %arg3: memref<6xi32, #tpu.memory_space<smem>>, %arg4: memref<8x384xbf16, #tpu.memory_space<vmem>>, %arg5: memref<128x256xbf16, #tpu.memory_space<vmem>>, %arg6: memref<8x256xf32, #tpu.memory_space<vmem>>, %arg7: memref<8x256xf32, #tpu.memory_space<vmem>>) attributes {dimension_semantics = [#tpu.dimension_semantics<arbitrary>], iteration_bounds = array<i64: 6>, scalar_prefetch = 3 : i64, scratch_operands = 1 : i64, tpu.core_type = #tpu.core_type<tc>, window_params = [{pipeline_mode = #tpu.pipeline_mode<synchronous>, transform_indices = @transform_0, window_bounds = array<i64: 8, 384>}, {transform_indices = @transform_1, window_bounds = array<i64: 128, 256>}, {transform_indices = @transform_2, window_bounds = array<i64: 8, 256>}]} {
    %0 = arith.index_cast %arg0 : i32 to index
    %1 = memref.load %arg3[%0] : memref<6xi32, #tpu.memory_space<smem>>
    %c1_i32 = arith.constant 1 : i32
    %2 = arith.cmpi eq, %1, %c1_i32 : i32
    %3 = arith.extui %2 : i1 to i32
    %c0_i32 = arith.constant 0 : i32
    %4 = arith.cmpi ne, %3, %c0_i32 : i32
    scf.if %4 {
      %cst_10 = arith.constant 0.000000e+00 : f32
      %18 = vector.broadcast %cst_10 : f32 to vector<8x256xf32>
      %c0_11 = arith.constant 0 : index
      %c0_12 = arith.constant 0 : index
      %19 = vector.load %arg7[%c0_11, %c0_12] : memref<8x256xf32, #tpu.memory_space<vmem>>, vector<8x256xf32>
      tpu.vector_store %arg7[%c0_11, %c0_12], %18 {strides = array<i32>} : memref<8x256xf32, #tpu.memory_space<vmem>>, vector<8x256xf32>,
    } else {
    }
    %5 = arith.index_cast %arg0 : i32 to index
    %6 = memref.load %arg2[%5] : memref<6xi32, #tpu.memory_space<smem>>
    %c128_i32 = arith.constant 128 : i32
    %7 = arith.muli %6, %c128_i32 : i32
    %8 = tpu.assume_multiple %7, 128 : i32
    %c0 = arith.constant 0 : index
    %c0_0 = arith.constant 0 : index
    %9 = vector.load %arg7[%c0, %c0_0] : memref<8x256xf32, #tpu.memory_space<vmem>>, vector<8x256xf32>
    %c0_1 = arith.constant 0 : index
    %10 = arith.index_cast %8 : i32 to index
    %11 = vector.load %arg4[%c0_1, %10] : memref<8x384xbf16, #tpu.memory_space<vmem>>, vector<8x128xbf16>
    %c0_2 = arith.constant 0 : index
    %c0_3 = arith.constant 0 : index
    %12 = vector.load %arg5[%c0_2, %c0_3] : memref<128x256xbf16, #tpu.memory_space<vmem>>, vector<128x256xbf16>
    %cst = arith.constant dense<0.000000e+00> : vector<8x256xf32>
    %13 = tpu.matmul %11, %12, %cst {dimension_numbers = #tpu.dot_dimension_numbers<[1], [0], [0], [1], [0, 0, 1, 1], [], []>} : vector<8x128xbf16>, vector<128x256xbf16>, vector<8x256xf32> -> vector<8x256xf32>
    %14 = arith.addf %9, %13 : vector<8x256xf32>
    %c0_4 = arith.constant 0 : index
    %c0_5 = arith.constant 0 : index
    %15 = vector.load %arg7[%c0_4, %c0_5] : memref<8x256xf32, #tpu.memory_space<vmem>>, vector<8x256xf32>
    tpu.vector_store %arg7[%c0_4, %c0_5], %14 {strides = array<i32>} : memref<8x256xf32, #tpu.memory_space<vmem>>, vector<8x256xf32>,
    %c0_6 = arith.constant 0 : index
    %c0_7 = arith.constant 0 : index
    %16 = vector.load %arg7[%c0_6, %c0_7] : memref<8x256xf32, #tpu.memory_space<vmem>>, vector<8x256xf32>
    %c0_8 = arith.constant 0 : index
    %c0_9 = arith.constant 0 : index
    %17 = vector.load %arg6[%c0_8, %c0_9] : memref<8x256xf32, #tpu.memory_space<vmem>>, vector<8x256xf32>
    tpu.vector_store %arg6[%c0_8, %c0_9], %16 {strides = array<i32>} : memref<8x256xf32, #tpu.memory_space<vmem>>, vector<8x256xf32>,
    return
  }
  func.func @transform_0(%arg0: i32, %arg1: memref<6xi32, #tpu.memory_space<smem>>, %arg2: memref<6xi32, #tpu.memory_space<smem>>, %arg3: memref<6xi32, #tpu.memory_space<smem>>) -> (i32, i32) {
    %c0_i32 = arith.constant 0 : i32
    %c0_i32_0 = arith.constant 0 : i32
    %c0_i32_1 = arith.constant 0 : i32
    return %c0_i32, %c0_i32_0 : i32, i32
  }
  func.func @transform_1(%arg0: i32, %arg1: memref<6xi32, #tpu.memory_space<smem>>, %arg2: memref<6xi32, #tpu.memory_space<smem>>, %arg3: memref<6xi32, #tpu.memory_space<smem>>) -> (i32, i32) {
    %c0_i32 = arith.constant 0 : i32
    %c0_i32_0 = arith.constant 0 : i32
    return %arg0, %c0_i32 : i32, i32
  }
  func.func @transform_2(%arg0: i32, %arg1: memref<6xi32, #tpu.memory_space<smem>>, %arg2: memref<6xi32, #tpu.memory_space<smem>>, %arg3: memref<6xi32, #tpu.memory_space<smem>>) -> (i32, i32) {
    %0 = arith.index_cast %arg0 : i32 to index
    %1 = memref.load %arg1[%0] : memref<6xi32, #tpu.memory_space<smem>>
    %c0_i32 = arith.constant 0 : i32
    %c0_i32_0 = arith.constant 0 : i32
    return %c0_i32, %1 : i32, i32
  }
}

</mosaic_0001>

<bundles_post_ra>
// kernel: tpu_custom_call.1
= control target key start
LH: loop header
LB: loop body
LE: loop exit
PB: predicated region body
PF: predicated region fallthrough
CT: control target
= control target key end

     0   :  { %s1115_s0 = inlined_call_operand.hbm [shape: s32[6], index: 0, kind: input, shape index: {}]   ;;  %s1116_s3 = inlined_call_operand.hbm [shape: bf16[8,384], index: 3, kind: input, shape index: {}]   ;;  %s1117_s4 = inlined_call_operand.hbm [shape: bf16[768,256], index: 4, kind: input, shape index: {}]   ;;  %s1118_s5 = inlined_call_operand.hbm [shape: f32[8,512], index: 5, kind: output, shape index: {}]   ;;  %s1119_s1 = inlined_call_operand.vmem [shape: s32[6], index: 1, kind: input, shape index: {}]   ;;  %s1120_s2 = inlined_call_operand.vmem [shape: s32[6], index: 2, kind: input, shape index: {}]  }
   0x1   :  { %s611_s20 = scalar_lea.hbm %s1115_s0, 16 }
   0x2   :  { %p612_p0 = scmp.ne.s32.totalorder %s1115_s0, %s611_s20  ;;  %p615_p1 = scmp.lt.u32.totalorder %s611_s20, %s1115_s0 }
   0x4   :  { %p617_p2 = pnand %p615_p1, %p612_p0 }
   0x6   :  { %620 = shalt.err (!%p617_p2)  }
   0x7   :  { %s801_s25 = smov [#allocation4]   ;;  %s12_s30 = sshll.u32 %s1119_s1, 4  ;;  %s13_s30 = int_to_ptr.vmem [resolvable:$true] %s12_s30 }
   0x8   :  { %11 = dma.hbm_to_smem %s1115_s0, 16, %s801_s25, [#allocation3] }
   0x9   :  { %s16_s8 = sshll.u32 %s1120_s2, 4  ;;  %s621_s9 = scalar_lea.vmem %s13_s30, 16  ;;  %s17_s8 = int_to_ptr.vmem [resolvable:$true] %s16_s8 }
   0xa   :  { %p622_p3 = scmp.ne.s32.totalorder %s13_s30, %s621_s9  ;;  %p626_p4 = scmp.lt.s32.totalorder %s13_s30, %s13_s30 }
   0xb   :  { %p627_p5 = scmp.lt.s32.totalorder %s621_s9, %s621_s9 }
   0xd   :  { %p628_p6 = por %p627_p5, %p626_p4 }
   0xf   :  { %p629_p7 = pnand %p628_p6, %p622_p3 }
  0x11   :  { %632 = shalt.err (!%p629_p7)  }
  0x12   :  { %s802_s10 = smov [#allocation5]   ;;  %s633_s0 = scalar_lea.vmem %s17_s8, 16 }
  0x13   :  { %15 = dma.vmem_to_smem %s13_s30, 16, %s802_s10, [#allocation3] }
  0x14   :  { %p634_p8 = scmp.ne.s32.totalorder %s17_s8, %s633_s0  ;;  %p638_p9 = scmp.lt.s32.totalorder %s17_s8, %s17_s8 }
  0x15   :  { %p639_p10 = scmp.lt.s32.totalorder %s633_s0, %s633_s0 }
  0x17   :  { %p640_p11 = por %p639_p10, %p638_p9 }
  0x19   :  { %p641_p12 = pnand %p640_p11, %p634_p8 }
  0x1b   :  { %644 = shalt.err (!%p641_p12)  }
  0x1c   :  { %s803_s1 = smov [#allocation6]  }
  0x1d   :  { %19 = dma.vmem_to_smem %s17_s8, 16, %s803_s1, [#allocation3] }
  0x1e   :  { %759 = dma.done.wait [#allocation3], 48 }
  0x1f   :  { %760 = vsyncadd [#allocation3], 4294967248 }
  0x20   :  { %21 = sfence }
  0x21   :  { %22 = vsyncpa [#allocation8], 0 }
  0x22   :  { %23 = vsyncpa [#allocation11], 0 }
  0x23   :  { %25 = vsyncpa [#allocation11 + $0x1], 0 }
  0x24   :  { %26 = vsyncpa [#allocation9], 0 }
  0x25   :  { %28 = vsyncpa [#allocation9 + $0x1], 0  ;;  %s859_s2 = smov 0   ;;  %s861_s11 = smov 0  }
  0x26   :  { %s863_s12 = smov 0   ;;  %s865_s13 = smov 0  }
  0x27   :  { %s867_s14 = smov 0   ;;  %s869_s15 = smov 0  }
  0x28   :  { %s871_s16 = smov 0  }
  0x29 LB: > { %s893_s17 = sadd.s32 4294967295, %s799_s16   ;;  %s458_s18 = sadd.s32 4294967294, %s799_s16   ;;  %s799_s16 = sphi %s871_s16, %s1146_s16   ;;  %s795_s15 = sphi %s869_s15, %s1145_s15   ;;  %s791_s14 = sphi %s867_s14, %s1144_s14   ;;  %s787_s13 = sphi %s865_s13, %s1143_s13   ;;  %s783_s12 = sphi %s863_s12, %s1142_s12   ;;  %s779_s11 = sphi %s861_s11, %s1141_s11   ;;  %s775_s2 = sphi %s859_s2, %s1140_s2  }
  0x2a   : > { %s897_s19 = sadd.s32 1, %s799_s16   ;;  %s62_s20 = sadd.s32 1, %s795_s15 }
  0x2b   : > { %s59_s21 = ssub.s32 %s799_s16, %s897_s19  ;;  %p69_p13 = scmp.ne.s32.totalorder %s795_s15, %s791_s14 }
  0x2c   : > { %p60_p0 = scmp.eq.s32.totalorder %s59_s21, 0  ;;  %p70_p1 = scmp.eq.s32.totalorder %s799_s16, 0 }
  0x2d   : > { %p75_p2 = scmp.ne.s32.totalorder %s791_s14, %s787_s13  ;;  %p1121_p3 = scmp.eq.s32.totalorder %s893_s17, 0 }
  0x2e   : > { %s908_s22 = scalar_select %p60_p0, %s795_s15, %s62_s20  }
  0x2f   : > { %p910_p4 = por %p70_p1, %p69_p13  ;;  %p916_p5 = por %p1121_p3, %p75_p2 }
  0x30   : > { %s85_s25 = sld [smem:[#allocation4 + %s799_s16]]  ;;  %s90_s27 = sadd.s32 1, %s783_s12 }
  0x31   : > { %s1125_s23 = scalar_select %p910_p4, 1, 0 }
  0x32   : > { %s1126_s24 = scalar_select %p916_p5, 1, 0 }
  0x33   : > { %s86_s26 = sld [smem:[#allocation4 + %s897_s19]]  ;;  %p100_p6 = scmp.ne.s32.totalorder %s783_s12, %s779_s11 }
  0x34   : > { %p101_p7 = scmp.eq.s32.totalorder %s893_s17, 5  ;;  %p106_p8 = scmp.ne.s32.totalorder %s779_s11, %s775_s2 }
  0x35   : > { %p107_p9 = scmp.eq.s32.totalorder %s458_s18, 5  ;;  %p459_p10 = scmp.ge.s32.totalorder %s799_s16, 1 }
  0x36   : > { %p929_p11 = por %p101_p7, %p100_p6  ;;  %p114_p12 = scmp.lt.s32.totalorder %s799_s16, 7 }
  0x37   : > { %p934_p13 = por %p107_p9, %p106_p8  ;;  %s804_s7 = smov [#allocation7]  }
  0x38   : > { %s1127_s28 = scalar_select %p929_p11, 1, 0 }
  0x39   : > { %s1128_s29 = scalar_select %p934_p13, 1, 0 }
  0x3a   : > { %s87_s30 = ssub.s32 %s85_s25, %s86_s26  ;;  %p938_p0 = pnand %p459_p10, %p114_p12 }
  0x3b   : > { %p88_p1 = scmp.eq.s32.totalorder %s87_s30, 0  ;;  %s127_s8 = sshll.u32 %s804_s7, 4  ;;  %s128_s8 = int_to_ptr.vmem [resolvable:$true] %s127_s8 }
  0x3c   : > { %s1129_s6 = scalar_select %p938_p0, 1, 0 }
  0x3d   : > { %p507_p2 = pneg %p938_p0  ;;  %s138_s0 = sand.u32 1, %s795_s15  }
  0x3e   : > { %s945_s9 = scalar_select %p88_p1, %s783_s12, %s90_s27  }
  0x3f   : > { %p949_p6 = pnand %p507_p2, %p1121_p3  ;;  %s645_s18 = scalar_lea.hbm %s1116_s3, 192 }
  0x40   : > { %p646_p8 = scmp.ne.s32.totalorder %s1116_s3, %s645_s18  ;;  %p652_p1 = scmp.lt.u32.totalorder %s645_s18, %s1116_s3 }
  0x41   : > { %p647_p9 = pneg %p949_p6 }
  0x43   : > { %p648_p10 = pnand %p647_p9, %p646_p8 }
  0x45   : > { %p649_p12 = pneg %p648_p10 }
  0x47   : > { %p654_p2 = pnand %p652_p1, %p649_p12 }
  0x49   : > { %657 = shalt.err (!%p654_p2)
}
  0x4a   : > { %s658_s27 = scalar_lea.vmem %s128_s8, 192  ;;  %p666_p11 = scmp.lt.s32.totalorder %s128_s8, %s128_s8 }
  0x4b   : > { %p659_p3 = scmp.ne.s32.totalorder %s128_s8, %s658_s27  ;;  %p667_p5 = scmp.lt.s32.totalorder %s658_s27, %s658_s27 }
  0x4d   : > { %p661_p7 = pnand %p659_p3, %p647_p9  ;;  %p668_p0 = por %p667_p5, %p666_p11 }
  0x4f   : > { %p662_p13 = pneg %p661_p7 }
  0x51   : > { %p669_p4 = pnand %p668_p0, %p662_p13 }
  0x53   : > { %672 = shalt.err (!%p669_p4)
}
  0x54   : > { %510 = dma.hbm_to_vmem [thread:$0]  (!%p949_p6), %s1116_s3, 192, %s128_s8, [#allocation8]  }
  0x55   : > { %p1131_p8 = scmp.ne.s32.totalorder %s1125_s23, 0  ;;  %p1132_p10 = scmp.lt.s32.totalorder %s799_s16, 6 }
  0x56   : > { %s462_s13 = sshll.u32 %s138_s0, 7  ;;  %s495_s18 = sshll.u32 %s799_s16, 11 }
  0x57   : > { %p975_p12 = pnand %p1132_p10, %p1131_p8  ;;  %s983_s10 = scalar_lea.hbm %s1117_s4, %s495_s18 }
  0x58   : > { %s142_s8 = scalar_lea.vmem [#allocation10], %s462_s13  ;;  %s987_s25 = scalar_lea.sflag [#allocation11], %s138_s0 }
  0x59   : > { %s150_s23 = sshll.u32 %s142_s8, 4  ;;  %s673_s26 = scalar_lea.hbm %s983_s10, 2048  ;;  %s985_s23 = int_to_ptr.vmem [resolvable:$true] %s150_s23 }
  0x5a   : > { %p674_p3 = scmp.ne.s32.totalorder %s983_s10, %s673_s26  ;;  %p675_p4 = pneg %p975_p12 }
  0x5b   : > { %s678_s7 = scalar_lea.hbm %s1117_s4, 12288  ;;  %p679_p13 = scmp.lt.u32.totalorder %s983_s10, %s1117_s4 }
  0x5c   : > { %p676_p5 = pnand %p675_p4, %p674_p3  ;;  %p680_p0 = scmp.lt.u32.totalorder %s678_s7, %s673_s26 }
  0x5d   : > { %p682_p7 = scmp.lt.u32.totalorder %s673_s26, %s983_s10 }
  0x5e   : > { %p677_p11 = pneg %p676_p5  ;;  %p681_p6 = por %p680_p0, %p679_p13 }
  0x60   : > { %p683_p9 = por %p682_p7, %p681_p6 }
  0x62   : > { %p684_p1 = pnand %p683_p9, %p677_p11 }
  0x64   : > { %687 = shalt.err (!%p684_p1)
}
  0x65   : > { %s688_s0 = scalar_lea.vmem %s985_s23, 2048  ;;  %s805_s13 = smov [#allocation10]  }
  0x66   : > { %p689_p2 = scmp.ne.s32.totalorder %s985_s23, %s688_s0  ;;  %s693_s21 = sshll.u32 %s805_s13, 4  ;;  %s694_s21 = int_to_ptr.vmem [resolvable:$false] %s693_s21 }
  0x67   : > { %s695_s8 = scalar_lea.vmem %s694_s21, 4096  ;;  %p696_p3 = scmp.lt.s32.totalorder %s985_s23, %s694_s21 }
  0x68   : > { %p691_p8 = pnand %p689_p2, %p675_p4  ;;  %p697_p5 = scmp.lt.s32.totalorder %s695_s8, %s688_s0 }
  0x6a   : > { %p692_p10 = pneg %p691_p8  ;;  %p698_p13 = por %p697_p5, %p696_p3 }
  0x6c   : > { %p699_p0 = pnand %p698_p13, %p692_p10 }
  0x6e   : > { %702 = shalt.err (!%p699_p0)
}
  0x6f   : > { %s806_s26 = smov 128   ;;  %s807_s27 = smov 8  }
  0x70   : > { %514 = dma.hbm_to_vmem [thread:$0]  (!%p975_p12), %s983_s10, 2048, %s985_s23, %s987_s25, %s806_s26, %s806_s26, %s807_s27  }
  0x71   : > { %p1134_p4 = scmp.ne.s32.totalorder %s1129_s6, 0 }
  0x72   : > { %p1135_p11 = scmp.eq.s32.totalorder (!%p1134_p4), %s893_s17, 0 }
  0x73   : > { %162 = sbr.rel (%p1134_p4) target bundleno = 404 (0x194), region = 28 }
  0x7a   : > { %762 = dma.done.wait (%p1135_p11), [#allocation8], 192   ;;  %p1136_p6 = pmov %p1135_p11 }
  0x7b   : > { %s168_s30 = sand.u32 1, %s791_s14   ;;  %p1137_p7 = scmp.ne.s32.totalorder %s1126_s24, 0 }
  0x7c   : > { %764 = vsyncadd (%p1136_p6), [#allocation8], 4294967104  ;;  %s468_s7 = sshll.u32 %s168_s30, 7  ;;  %s169_s18 = scalar_lea.sflag [#allocation11], %s168_s30 }
  0x7d   : > { %s1022_s20 = scalar_lea.vmem [#allocation10], %s468_s7 }
  0x7e   : > { %766 = dma.done.wait (%p1137_p7), %s169_s18, 2048  }
  0x7f   : > { %768 = vsyncadd (%p1137_p7), %s169_s18, 4294965248  ;;  %s190_s6 = sand.u32 1, %s779_s11   ;;  %s197_s1 = sld [smem:[#allocation6 + %s893_s17]] }
  0x80   : > { %s469_s10 = sshll.u32 %s190_s6, 4 }
  0x81   : > { %s1032_s23 = scalar_lea.vmem [#allocation12], %s469_s10 }
  0x85   : > { %p470_p12 = scmp.ne.s32.totalorder %s197_s1, 1 }
  0x86   : > { %v808_v0 = vmov (!%p470_p12), 0.0  }
  0x87   : > { %201 = sbr.rel (%p470_p12) target bundleno = 142 (0x8e), region = 40  ;;  %202 = vst [vmem:[#allocation2] sm:$0xff] (!%p470_p12), %v808_v0  ;;  %203 = vst [vmem:[#allocation2 + $0x8] sm:$0xff] (!%p470_p12), %v808_v0 }
  0x8e PF: > { %v587_v1 = vld [vmem:[%s1022_s20 + $0x4] ss:$8 sps:$4 sm:$0xff]   ;;  %v589_v2 = vld [vmem:[%s1022_s20] ss:$8 sps:$4 sm:$0xff]   ;;  %v809_v3 = vmov 0   ;;  %s204_s24 = sld [smem:[#allocation5 + %s893_s17]] }
  0x8f   : > { %341 = vmatprep.mubr.bf16.mxu0 %v809_v3  ;;  %309 = vmatprep.subr.bf16.mxu0 %v587_v1  ;;  %v590_v4 = vld [vmem:[%s1022_s20 + $0x14] ss:$8 sps:$4 sm:$0xff]   ;;  %v592_v5 = vld [vmem:[%s1022_s20 + $0x10] ss:$8 sps:$4 sm:$0xff]   ;;  %v593_v6 = vld [vmem:[%s1022_s20 + $0x24] ss:$8 sps:$4 sm:$0xff]  }
  0x90   : > { %310 = vmatpush1.bf16.msra.mxu0 %v589_v2  ;;  %v595_v7 = vld [vmem:[%s1022_s20 + $0x20] ss:$8 sps:$4 sm:$0xff]   ;;  %v596_v8 = vld [vmem:[%s1022_s20 + $0x34] ss:$8 sps:$4 sm:$0xff]   ;;  %v598_v9 = vld [vmem:[%s1022_s20 + $0x30] ss:$8 sps:$4 sm:$0xff]  }
  0x91   : > { %311 = vmatprep.subr.bf16.mxu0 %v590_v4  ;;  %v599_v10 = vld [vmem:[%s1022_s20 + $0x44] ss:$8 sps:$4 sm:$0xff]   ;;  %v601_v11 = vld [vmem:[%s1022_s20 + $0x40] ss:$8 sps:$4 sm:$0xff]   ;;  %v602_v12 = vld [vmem:[%s1022_s20 + $0x54] ss:$8 sps:$4 sm:$0xff]  }
  0x92   : > { %v604_v13 = vld [vmem:[%s1022_s20 + $0x50] ss:$8 sps:$4 sm:$0xff]   ;;  %v605_v14 = vld [vmem:[%s1022_s20 + $0x64] ss:$8 sps:$4 sm:$0xff]   ;;  %v607_v15 = vld [vmem:[%s1022_s20 + $0x60] ss:$8 sps:$4 sm:$0xff]  }
  0x93   : > { %v608_v16 = vld [vmem:[%s1022_s20 + $0x74] ss:$8 sps:$4 sm:$0xff]   ;;  %v610_v17 = vld [vmem:[%s1022_s20 + $0x70] ss:$8 sps:$4 sm:$0xff]   ;;  %p1138_p9 = scmp.ne.s32.totalorder %s1127_s28, 0  ;;  %v206_v19 = vld [vmem:[#allocation2] sm:$0xff] }
  0x94   : > { %312 = vmatpush1.bf16.msra.mxu0 %v592_v5  ;;  %s471_s25 = sshll.u32 %s204_s24, 7  ;;  %v207_v20 = vld [vmem:[#allocation2 + $0x8] sm:$0xff]  ;;  %s374_s30 = sshll.u32 %s1032_s23, 4  ;;  %s1062_s30 = int_to_ptr.vmem [resolvable:$true] %s374_s30 }
  0x95   : > { %313 = vmatprep.subr.bf16.mxu0 %v593_v6  ;;  %s208_s0 = sshra.s32 %s471_s25, 7  ;;  %s1148_s17 = smov (!%p1138_p9, %s893_s17), 0 }
  0x96   : > { %s472_s13 = sshll.u32 %s208_s0, 2  ;;  %s703_s1 = scalar_lea.vmem %s1062_s30, 256 }
  0x97   : > { %s211_s21 = scalar_lea.vmem [#allocation7], %s472_s13  ;;  %p704_p1 = scmp.ne.s32.totalorder %s1062_s30, %s703_s1 }
  0x98   : > { %314 = vmatpush1.bf16.msra.mxu0 %v595_v7  ;;  %v212_v18 = vld [vmem:[%s211_s21] sm:$0xf]  ;;  %s503_s8 = scalar_select %p1138_p9, [#allocation4], [#allocation13] }
  0x99   : > { %315 = vmatprep.subr.bf16.mxu0 %v596_v8  ;;  %p705_p2 = pnand %p704_p1, %p1138_p9  ;;  %s810_s10 = smov [#allocation12]  }
  0x9a   : > { %s366_s26 = sld [smem:[%s503_s8 + %s1148_s17]]  ;;  %s359_s17 = scalar_lea.sflag [#allocation9], %s190_s6 }
  0x9b   : > { %p706_p8 = pneg %p705_p2  ;;  %s707_s24 = sshll.u32 %s810_s10, 4  ;;  %s708_s24 = int_to_ptr.vmem [resolvable:$false] %s707_s24 }
  0x9c   : > { %316 = vmatpush1.bf16.msra.mxu0 %v598_v9  ;;  %s709_s25 = scalar_lea.vmem %s708_s24, 512  ;;  %p710_p10 = scmp.lt.s32.totalorder %s1062_s30, %s708_s24 }
  0x9d   : > { %317 = vmatprep.subr.bf16.mxu0 %v599_v10  ;;  %p711_p3 = scmp.lt.s32.totalorder %s709_s25, %s703_s1 }
  0x9f   : > { %p712_p5 = por %p711_p3, %p710_p10 }
  0xa0   : > { %318 = vmatpush1.bf16.msra.mxu0 %v601_v11  ;;  %s496_s27 = sshll.u32 %s366_s26, 8 }
  0xa1   : > { %319 = vmatprep.subr.bf16.mxu0 %v602_v12  ;;  %s1060_s20 = scalar_lea.hbm %s1118_s5, %s496_s27  ;;  %p713_p13 = pnand %p712_p5, %p706_p8 }
  0xa4   : > { %320 = vmatpush1.bf16.msra.mxu0 %v604_v13 }
  0xa5   : > { %321 = vmatprep.subr.bf16.mxu0 %v605_v14 }
  0xa8   : > { %322 = vmatpush1.bf16.msra.mxu0 %v607_v15 }
  0xa9   : > { %323 = vmatprep.subr.bf16.mxu0 %v608_v16 }
  0xac   : > { %324 = vmatpush1.bf16.msra.mxu0 %v610_v17 }
  0xaf   : > { %342 = vmatmul.mubr.bf16.vlgmr.msra.gmra.mrb[0].mxu0 %v212_v18 }
 0x182   : > { %v343_v21 = vpop.f32.mrb[0].mxu0 }
 0x183   : > { %v350_v22 = vadd.f32 %v343_v21, %v206_v19  ;;  %v345_v23 = vpop.f32.mrb[1].mxu0 }
 0x184   : > { %v351_v24 = vadd.f32 %v345_v23, %v207_v20  ;;  %v347_v25 = vpop.f32.mrb[2].mxu0 }
 0x185   : > { %352 = vst [vmem:[#allocation2] sm:$0xff] %v350_v22  ;;  %v348_v26 = vpop.f32.mrb[3].mxu0  ;;  %356 = vst [vmem:[%s1032_s23] sm:$0xff] %v350_v22 }
 0x186   : > { %353 = vst [vmem:[#allocation2 + $0x8] sm:$0xff] %v351_v24  ;;  %357 = vst [vmem:[%s1032_s23 + $0x8] sm:$0xff] %v351_v24 }
 0x187   : > { %716 = shalt.err (!%p713_p13)
}
 0x188   : > { %s717_s6 = scalar_lea.hbm %s1060_s20, 256  ;;  %s721_s13 = scalar_lea.hbm %s1118_s5, 512 }
 0x189   : > { %p718_p0 = scmp.ne.s32.totalorder %s1060_s20, %s717_s6  ;;  %p722_p6 = scmp.lt.u32.totalorder %s1060_s20, %s1118_s5 }
 0x18a   : > { %p723_p7 = scmp.lt.u32.totalorder %s721_s13, %s717_s6  ;;  %p725_p1 = scmp.lt.u32.totalorder %s717_s6, %s1060_s20 }
 0x18b   : > { %p719_p4 = pnand %p718_p0, %p1138_p9 }
 0x18c   : > { %p724_p12 = por %p723_p7, %p722_p6 }
 0x18d   : > { %p720_p11 = pneg %p719_p4 }
 0x18e   : > { %p726_p2 = por %p725_p1, %p724_p12 }
 0x190   : > { %p727_p8 = pnand %p726_p2, %p720_p11 }
 0x192   : > { %730 = shalt.err (!%p727_p8)
}
 0x193   : > { %505 = dma.vmem_to_hbm [thread:$0]  (%p1138_p9), %s1062_s30, 256, %s1060_s20, %s359_s17  }
 0x194 PF: > { %p522_p10 = scmp.ge.s32.totalorder %s799_s16, 2  ;;  %s386_s26 = sand.u32 1, %s775_s2  }
 0x195   : > { %p1139_p3 = scmp.ne.s32.totalorder %s1128_s29, 0  ;;  %s387_s27 = scalar_lea.sflag [#allocation9], %s386_s26 }
 0x197   : > { %p516_p5 = pnand %p522_p10, %p1139_p3 }
 0x199   : > { %770 = dma.done.wait (!%p516_p5), %s387_s27, 256  }
 0x19a   : > { %772 = vsyncadd (!%p516_p5), %s387_s27, 4294967040  ;;  %p31_p9 = scmp.ge.s32.totalorder %s897_s19, 8   ;;  %s1140_s2 = smov %s779_s11 }
 0x19b   : > { %s1141_s11 = smov %s783_s12  ;;  %s1142_s12 = smov %s945_s9 }
 0x19c   : > { %s1143_s13 = smov %s791_s14  ;;  %s1144_s14 = smov %s795_s15 }
 0x19d   : > { %s1145_s15 = smov %s908_s22  ;;  %s1146_s16 = smov %s897_s19 }
 0x19e   :  { %33 = sbr.rel (!%p31_p9) target bundleno = 41 (0x29), region = 83 }
 0x1a5   :  { %392 = vsyncpa [#allocation8], 1 }
 0x1a6   :  { %394 = vsyncpa [#allocation8 + $0x1], 1 }
 0x1a7   :  { %395 = vsyncpa [#allocation11], 1 }
 0x1a8   :  { %397 = vsyncpa [#allocation11 + $0x1], 1 }
 0x1a9   :  { %398 = vsyncpa [#allocation9], 1 }
 0x1aa   :  { %400 = vsyncpa [#allocation9 + $0x1], 1 }

</bundles_post_ra>
